<compile_context>
chip_gen: v7x
topology: tpu7x:2x2x1
jax: 0.10.0
libtpu: 0.0.40
codegen_flags: <defaults>
</compile_context>

<pallas_src>
import numpy as np
import jax
import jax.numpy as jnp
from jax import lax
from jax.experimental import pallas as pl
from jax.experimental.pallas import tpu as pltpu

EPS = 1e-5  # nn.InstanceNorm2d default eps


def _round_up(x, m):
    return ((x + m - 1) // m) * m


def _make_kernel(k, Wp, P_pad, C_in, inv_n):
    """Fused conv (single big-K dot) + instance-norm + relu kernel, static shapes."""

    def kernel(x_ref, w_ref, m_ref, o_ref, rhs_ref):
        # x_ref:   [C_in, L]            bf16  (reflection-padded input, flattened + zero tail)
        # w_ref:   [C_out, k*k*C_in]    bf16  (tap-major, then C_in)
        # m_ref:   [1, P_pad]           f32   (validity mask over the dense conv grid)
        # o_ref:   [C_out, P_pad]       out dtype
        # rhs_ref: [k*k*C_in, P_pad]    bf16  VMEM scratch (stacked shifted views)

        # Stage the k*k shifted views as one tall RHS (in VMEM, no HBM im2col).
        for di in range(k):
            for dj in range(k):
                t = di * k + dj
                rhs_ref[pl.ds(t * C_in, C_in), :] = x_ref[:, pl.ds(di * Wp + dj, P_pad)]

        # Single MXU pass: [C_out, k*k*C_in] @ [k*k*C_in, P_pad] -> f32.
        acc = jnp.dot(w_ref[...], rhs_ref[...], preferred_element_type=jnp.float32)

        # InstanceNorm2d(affine=False), two-pass masked statistics (f32).
        vf = m_ref[...]                                            # [1, P_pad]
        mean = jnp.sum(acc * vf, axis=1, keepdims=True) * inv_n    # [C_out, 1]
        d = (acc - mean) * vf
        var = jnp.sum(d * d, axis=1, keepdims=True) * inv_n        # biased variance
        y = (acc - mean) * lax.rsqrt(var + EPS)
        o_ref[...] = jnp.maximum(y, 0.0).astype(o_ref.dtype)       # ReLU

    return kernel


def relu_ins_conv2d(x, weight, bias, stride, padding):
    """x: [N, C_in, H, W] (NCHW). weight: [C_out, C_in, k, k]. bias: [C_out] (unused).

    The conv bias is a per-channel constant and is exactly removed by the InstanceNorm
    mean subtraction, so it is dropped (exact, not an approximation).
    """
    del bias
    N, C_in, H, W = x.shape
    C_out, _, kh, kw = weight.shape
    assert kh == kw, "square kernel expected"
    k = kh

    # ReflectionPad2d (cast to bf16 first so the pad pass moves half the bytes).
    xb = x.astype(jnp.bfloat16)
    if padding > 0:
        xb = jnp.pad(xb, ((0, 0), (0, 0), (padding, padding), (padding, padding)),
                     mode="reflect")
    Hp, Wp = H + 2 * padding, W + 2 * padding
    Ho = (Hp - k) // stride + 1
    Wo = (Wp - k) // stride + 1
    Hd = Hp - k + 1                      # dense (stride-1) conv rows computed in-kernel
    P_full = Hd * Wp                     # dense conv grid, flattened, pitch = Wp
    P_pad = _round_up(P_full, 128)       # lane-dense output width
    KK = k * k * C_in
    inv_n = 1.0 / float(Ho * Wo)         # number of *valid* spatial positions

    # Flatten spatial; zero tail so every shifted in-kernel slice stays in bounds.
    L = _round_up((k - 1) * (Wp + 1) + P_pad, 128)
    xf = xb.reshape(N, C_in, Hp * Wp)
    xf = jnp.pad(xf, ((0, 0), (0, 0), (0, L - Hp * Wp)))

    # Weights: [C_out, C_in, kh, kw] -> [C_out, (di, dj, c_in)] bf16 (matches RHS order).
    wf = jnp.transpose(weight, (0, 2, 3, 1)).reshape(C_out, KK).astype(jnp.bfloat16)

    # Validity mask over the dense grid (precomputed once; resident in VMEM).
    q = np.arange(P_pad)
    t = q % Wp
    r = q // Wp
    if stride == 1:
        valid = (q < P_full) & (t < Wo)
    else:
        valid = ((q < P_full)
                 & ((t % stride) == 0) & (t <= stride * (Wo - 1))
                 & ((r % stride) == 0) & (r <= stride * (Ho - 1)))
    vf = jnp.asarray(valid.astype(np.float32)).reshape(1, P_pad)

    out_dtype = x.dtype
    itemsize_out = jnp.dtype(out_dtype).itemsize
    est = (2 * C_in * L * 2                      # input double-buffer (bf16)
           + 2 * C_out * KK * 2                  # weights
           + 2 * P_pad * 4                       # mask
           + 2 * C_out * P_pad * itemsize_out    # output double-buffer
           + KK * P_pad * 2                      # RHS staging scratch
           + 4 * C_out * P_pad * 4)              # f32 acc + temporaries
    vmem_limit = int(min(max(4 * est, 32 * 1024 * 1024), 64 * 1024 * 1024))

    kernel = _make_kernel(k, Wp, P_pad, C_in, inv_n)

    out = pl.pallas_call(
        kernel,
        out_shape=jax.ShapeDtypeStruct((N, C_out, P_pad), out_dtype),
        grid_spec=pltpu.PrefetchScalarGridSpec(
            num_scalar_prefetch=0,
            grid=(N,),
            in_specs=[
                pl.BlockSpec((None, C_in, L), lambda n: (n, 0, 0)),   # one instance
                pl.BlockSpec((C_out, KK), lambda n: (0, 0)),          # shared weights
                pl.BlockSpec((1, P_pad), lambda n: (0, 0)),           # shared mask
            ],
            out_specs=pl.BlockSpec((None, C_out, P_pad), lambda n: (n, 0, 0)),
            scratch_shapes=[pltpu.VMEM((KK, P_pad), jnp.bfloat16)],
        ),
        compiler_params=pltpu.CompilerParams(
            dimension_semantics=("parallel",),
            vmem_limit_bytes=vmem_limit,
        ),
    )(xf, wf, vf)

    # [N, C_out, P_pad] -> NCHW: keep valid dense columns, then (strided) row/col slice.
    out = out[:, :, :P_full].reshape(N, C_out, Hd, Wp)
    out = out[:, :, : stride * (Ho - 1) + 1 : stride, : stride * (Wo - 1) + 1 : stride]
    return out


def _reference(x, weight, bias, stride, padding):
    """Pure-JAX (f32, HIGHEST) reference matching the PyTorch module semantics."""
    if padding > 0:
        x = jnp.pad(x, ((0, 0), (0, 0), (padding, padding), (padding, padding)),
                    mode="reflect")
    y = lax.conv_general_dilated(
        x, weight, window_strides=(stride, stride), padding="VALID",
        dimension_numbers=("NCHW", "OIHW", "NCHW"),
        precision=lax.Precision.HIGHEST,
    )
    y = y + bias.reshape(1, -1, 1, 1)   # kept to show the bias is a no-op post-norm
    mean = jnp.mean(y, axis=(2, 3), keepdims=True)
    var = jnp.mean((y - mean) ** 2, axis=(2, 3), keepdims=True)
    y = (y - mean) * lax.rsqrt(var + EPS)
    return jnp.maximum(y, 0.0)


if __name__ == "__main__":
    # ReLUINSConv2d(n_in=4, n_out=8, kernel_size=3, stride=1, padding=1)
    n_in, n_out, k, stride, padding = 4, 8, 3, 1, 1
    N, H, W = 2, 16, 16

    key = jax.random.PRNGKey(0)
    kx, kw, kb = jax.random.split(key, 3)

    x = jax.random.normal(kx, (N, n_in, H, W), dtype=jnp.float32)
    # gaussian_weights_init: Conv weights ~ N(0, 0.02)
    weight = 0.02 * jax.random.normal(kw, (n_out, n_in, k, k), dtype=jnp.float32)
    # Conv2d default bias init: U(-1/sqrt(fan_in), 1/sqrt(fan_in))
    bound = 1.0 / (n_in * k * k) ** 0.5
    bias = jax.random.uniform(kb, (n_out,), minval=-bound, maxval=bound,
                              dtype=jnp.float32)

    fwd = jax.jit(relu_ins_conv2d, static_argnums=(3, 4))
    out = jax.block_until_ready(fwd(x, weight, bias, stride, padding))
    ref = jax.block_until_ready(_reference(x, weight, bias, stride, padding))

    assert out.shape == (N, n_out, H, W), out.shape
    # bf16 MXU inputs (f32 accumulation / f32 two-pass norm stats) vs. f32 HIGHEST
    # reference: agreement on the unit-scale normalized output is ~1e-3..5e-3.
    assert jnp.allclose(out, ref, rtol=2e-2, atol=2e-2), "mismatch vs reference"

    print("KERNEL_OK")
</pallas_src>

<mosaic_0001>
module attributes {stable_mosaic.version = 11 : i64} {
  func.func @kernel(%arg0: i32, %arg1: memref<1x4x512xbf16, #tpu.memory_space<vmem>>, %arg2: memref<8x36xbf16, #tpu.memory_space<vmem>>, %arg3: memref<1x384xf32, #tpu.memory_space<vmem>>, %arg4: memref<1x8x384xf32, #tpu.memory_space<vmem>>, %arg5: memref<36x384xbf16, #tpu.memory_space<vmem>>) attributes {dimension_semantics = [#tpu.dimension_semantics<parallel>], iteration_bounds = array<i64: 2>, scalar_prefetch = 0 : i64, scratch_operands = 1 : i64, tpu.core_type = #tpu.core_type<tc>, window_params = [{transform_indices = @transform_0, window_bounds = array<i64: 1, 4, 512>}, {pipeline_mode = #tpu.pipeline_mode<synchronous>, transform_indices = @transform_1, window_bounds = array<i64: 8, 36>}, {pipeline_mode = #tpu.pipeline_mode<synchronous>, transform_indices = @transform_2, window_bounds = array<i64: 1, 384>}, {transform_indices = @transform_3, window_bounds = array<i64: 1, 8, 384>}]} {
    %c0 = arith.constant 0 : index
    %c0_0 = arith.constant 0 : index
    %c0_1 = arith.constant 0 : index
    %0 = vector.load %arg1[%c0, %c0_0, %c0_1] : memref<1x4x512xbf16, #tpu.memory_space<vmem>>, vector<1x4x384xbf16>
    %1 = vector.shape_cast %0 : vector<1x4x384xbf16> to vector<4x384xbf16>
    %c0_2 = arith.constant 0 : index
    %c0_3 = arith.constant 0 : index
    %2 = vector.load %arg5[%c0_2, %c0_3] : memref<36x384xbf16, #tpu.memory_space<vmem>>, vector<4x384xbf16>
    tpu.vector_store %arg5[%c0_2, %c0_3], %1 {strides = array<i32>} : memref<36x384xbf16, #tpu.memory_space<vmem>>, vector<4x384xbf16>,
    %c0_4 = arith.constant 0 : index
    %c0_5 = arith.constant 0 : index
    %c1 = arith.constant 1 : index
    %3 = vector.load %arg1[%c0_4, %c0_5, %c1] : memref<1x4x512xbf16, #tpu.memory_space<vmem>>, vector<1x4x384xbf16>
    %4 = vector.shape_cast %3 : vector<1x4x384xbf16> to vector<4x384xbf16>
    %c4 = arith.constant 4 : index
    %c0_6 = arith.constant 0 : index
    %5 = vector.load %arg5[%c4, %c0_6] : memref<36x384xbf16, #tpu.memory_space<vmem>>, vector<4x384xbf16>
    tpu.vector_store %arg5[%c4, %c0_6], %4 {strides = array<i32>} : memref<36x384xbf16, #tpu.memory_space<vmem>>, vector<4x384xbf16>,
    %c0_7 = arith.constant 0 : index
    %c0_8 = arith.constant 0 : index
    %c2 = arith.constant 2 : index
    %6 = vector.load %arg1[%c0_7, %c0_8, %c2] : memref<1x4x512xbf16, #tpu.memory_space<vmem>>, vector<1x4x384xbf16>
    %7 = vector.shape_cast %6 : vector<1x4x384xbf16> to vector<4x384xbf16>
    %c8 = arith.constant 8 : index
    %c0_9 = arith.constant 0 : index
    %8 = vector.load %arg5[%c8, %c0_9] : memref<36x384xbf16, #tpu.memory_space<vmem>>, vector<4x384xbf16>
    tpu.vector_store %arg5[%c8, %c0_9], %7 {strides = array<i32>} : memref<36x384xbf16, #tpu.memory_space<vmem>>, vector<4x384xbf16>,
    %c0_10 = arith.constant 0 : index
    %c0_11 = arith.constant 0 : index
    %c18 = arith.constant 18 : index
    %9 = vector.load %arg1[%c0_10, %c0_11, %c18] : memref<1x4x512xbf16, #tpu.memory_space<vmem>>, vector<1x4x384xbf16>
    %10 = vector.shape_cast %9 : vector<1x4x384xbf16> to vector<4x384xbf16>
    %c12 = arith.constant 12 : index
    %c0_12 = arith.constant 0 : index
    %11 = vector.load %arg5[%c12, %c0_12] : memref<36x384xbf16, #tpu.memory_space<vmem>>, vector<4x384xbf16>
    tpu.vector_store %arg5[%c12, %c0_12], %10 {strides = array<i32>} : memref<36x384xbf16, #tpu.memory_space<vmem>>, vector<4x384xbf16>,
    %c0_13 = arith.constant 0 : index
    %c0_14 = arith.constant 0 : index
    %c19 = arith.constant 19 : index
    %12 = vector.load %arg1[%c0_13, %c0_14, %c19] : memref<1x4x512xbf16, #tpu.memory_space<vmem>>, vector<1x4x384xbf16>
    %13 = vector.shape_cast %12 : vector<1x4x384xbf16> to vector<4x384xbf16>
    %c16 = arith.constant 16 : index
    %c0_15 = arith.constant 0 : index
    %14 = vector.load %arg5[%c16, %c0_15] : memref<36x384xbf16, #tpu.memory_space<vmem>>, vector<4x384xbf16>
    tpu.vector_store %arg5[%c16, %c0_15], %13 {strides = array<i32>} : memref<36x384xbf16, #tpu.memory_space<vmem>>, vector<4x384xbf16>,
    %c0_16 = arith.constant 0 : index
    %c0_17 = arith.constant 0 : index
    %c20 = arith.constant 20 : index
    %15 = vector.load %arg1[%c0_16, %c0_17, %c20] : memref<1x4x512xbf16, #tpu.memory_space<vmem>>, vector<1x4x384xbf16>
    %16 = vector.shape_cast %15 : vector<1x4x384xbf16> to vector<4x384xbf16>
    %c20_18 = arith.constant 20 : index
    %c0_19 = arith.constant 0 : index
    %17 = vector.load %arg5[%c20_18, %c0_19] : memref<36x384xbf16, #tpu.memory_space<vmem>>, vector<4x384xbf16>
    tpu.vector_store %arg5[%c20_18, %c0_19], %16 {strides = array<i32>} : memref<36x384xbf16, #tpu.memory_space<vmem>>, vector<4x384xbf16>,
    %c0_20 = arith.constant 0 : index
    %c0_21 = arith.constant 0 : index
    %c36 = arith.constant 36 : index
    %18 = vector.load %arg1[%c0_20, %c0_21, %c36] : memref<1x4x512xbf16, #tpu.memory_space<vmem>>, vector<1x4x384xbf16>
    %19 = vector.shape_cast %18 : vector<1x4x384xbf16> to vector<4x384xbf16>
    %c24 = arith.constant 24 : index
    %c0_22 = arith.constant 0 : index
    %20 = vector.load %arg5[%c24, %c0_22] : memref<36x384xbf16, #tpu.memory_space<vmem>>, vector<4x384xbf16>
    tpu.vector_store %arg5[%c24, %c0_22], %19 {strides = array<i32>} : memref<36x384xbf16, #tpu.memory_space<vmem>>, vector<4x384xbf16>,
    %c0_23 = arith.constant 0 : index
    %c0_24 = arith.constant 0 : index
    %c37 = arith.constant 37 : index
    %21 = vector.load %arg1[%c0_23, %c0_24, %c37] : memref<1x4x512xbf16, #tpu.memory_space<vmem>>, vector<1x4x384xbf16>
    %22 = vector.shape_cast %21 : vector<1x4x384xbf16> to vector<4x384xbf16>
    %c28 = arith.constant 28 : index
    %c0_25 = arith.constant 0 : index
    %23 = vector.load %arg5[%c28, %c0_25] : memref<36x384xbf16, #tpu.memory_space<vmem>>, vector<4x384xbf16>
    tpu.vector_store %arg5[%c28, %c0_25], %22 {strides = array<i32>} : memref<36x384xbf16, #tpu.memory_space<vmem>>, vector<4x384xbf16>,
    %c0_26 = arith.constant 0 : index
    %c0_27 = arith.constant 0 : index
    %c38 = arith.constant 38 : index
    %24 = vector.load %arg1[%c0_26, %c0_27, %c38] : memref<1x4x512xbf16, #tpu.memory_space<vmem>>, vector<1x4x384xbf16>
    %25 = vector.shape_cast %24 : vector<1x4x384xbf16> to vector<4x384xbf16>
    %c32 = arith.constant 32 : index
    %c0_28 = arith.constant 0 : index
    %26 = vector.load %arg5[%c32, %c0_28] : memref<36x384xbf16, #tpu.memory_space<vmem>>, vector<4x384xbf16>
    tpu.vector_store %arg5[%c32, %c0_28], %25 {strides = array<i32>} : memref<36x384xbf16, #tpu.memory_space<vmem>>, vector<4x384xbf16>,
    %c0_29 = arith.constant 0 : index
    %c0_30 = arith.constant 0 : index
    %27 = vector.load %arg2[%c0_29, %c0_30] : memref<8x36xbf16, #tpu.memory_space<vmem>>, vector<8x36xbf16>
    %c0_31 = arith.constant 0 : index
    %c0_32 = arith.constant 0 : index
    %28 = vector.load %arg5[%c0_31, %c0_32] : memref<36x384xbf16, #tpu.memory_space<vmem>>, vector<36x384xbf16>
    %cst = arith.constant dense<0.000000e+00> : vector<8x384xf32>
    %29 = tpu.matmul %27, %28, %cst {dimension_numbers = #tpu.dot_dimension_numbers<[1], [0], [0], [1], [0, 0, 1, 1], [], []>} : vector<8x36xbf16>, vector<36x384xbf16>, vector<8x384xf32> -> vector<8x384xf32>
    %c0_33 = arith.constant 0 : index
    %c0_34 = arith.constant 0 : index
    %30 = vector.load %arg3[%c0_33, %c0_34] : memref<1x384xf32, #tpu.memory_space<vmem>>, vector<1x384xf32>
    %31 = vector.broadcast %30 : vector<1x384xf32> to vector<8x384xf32>
    %32 = arith.mulf %29, %31 : vector<8x384xf32>
    %cst_35 = arith.constant dense<0.000000e+00> : vector<8xf32>
    %33 = vector.multi_reduction <add>, %32, %cst_35 [1] : vector<8x384xf32> to vector<8xf32>
    %34 = vector.shape_cast %33 : vector<8xf32> to vector<8x1xf32>
    %cst_36 = arith.constant 3.906250e-03 : f32
    %35 = vector.broadcast %cst_36 : f32 to vector<8x1xf32>
    %36 = arith.mulf %34, %35 : vector<8x1xf32>
    %37 = vector.broadcast %36 : vector<8x1xf32> to vector<8x384xf32>
    %38 = arith.subf %29, %37 : vector<8x384xf32>
    %39 = vector.broadcast %30 : vector<1x384xf32> to vector<8x384xf32>
    %40 = arith.mulf %38, %39 : vector<8x384xf32>
    %41 = arith.mulf %40, %40 : vector<8x384xf32>
    %cst_37 = arith.constant dense<0.000000e+00> : vector<8xf32>
    %42 = vector.multi_reduction <add>, %41, %cst_37 [1] : vector<8x384xf32> to vector<8xf32>
    %43 = vector.shape_cast %42 : vector<8xf32> to vector<8x1xf32>
    %cst_38 = arith.constant 3.906250e-03 : f32
    %44 = vector.broadcast %cst_38 : f32 to vector<8x1xf32>
    %45 = arith.mulf %43, %44 : vector<8x1xf32>
    %46 = vector.broadcast %36 : vector<8x1xf32> to vector<8x384xf32>
    %47 = arith.subf %29, %46 : vector<8x384xf32>
    %cst_39 = arith.constant 9.99999974E-6 : f32
    %48 = vector.broadcast %cst_39 : f32 to vector<8x1xf32>
    %49 = arith.addf %45, %48 : vector<8x1xf32>
    %50 = math.rsqrt %49 : vector<8x1xf32>
    %51 = vector.broadcast %50 : vector<8x1xf32> to vector<8x384xf32>
    %52 = arith.mulf %47, %51 : vector<8x384xf32>
    %cst_40 = arith.constant 0.000000e+00 : f32
    %53 = vector.broadcast %cst_40 : f32 to vector<8x384xf32>
    %54 = arith.maximumf %52, %53 : vector<8x384xf32>
    %c0_41 = arith.constant 0 : index
    %c0_42 = arith.constant 0 : index
    %c0_43 = arith.constant 0 : index
    %55 = vector.load %arg4[%c0_41, %c0_42, %c0_43] : memref<1x8x384xf32, #tpu.memory_space<vmem>>, vector<1x8x384xf32>
    %56 = vector.shape_cast %55 : vector<1x8x384xf32> to vector<8x384xf32>
    %57 = vector.shape_cast %54 : vector<8x384xf32> to vector<1x8x384xf32>
    tpu.vector_store %arg4[%c0_41, %c0_42, %c0_43], %57 {strides = array<i32>} : memref<1x8x384xf32, #tpu.memory_space<vmem>>, vector<1x8x384xf32>,
    return
  }
  func.func @transform_0(%arg0: i32) -> (i32, i32, i32) {
    %c0_i32 = arith.constant 0 : i32
    %c0_i32_0 = arith.constant 0 : i32
    %c0_i32_1 = arith.constant 0 : i32
    return %arg0, %c0_i32, %c0_i32_0 : i32, i32, i32
  }
  func.func @transform_1(%arg0: i32) -> (i32, i32) {
    %c0_i32 = arith.constant 0 : i32
    %c0_i32_0 = arith.constant 0 : i32
    %c0_i32_1 = arith.constant 0 : i32
    return %c0_i32, %c0_i32_0 : i32, i32
  }
  func.func @transform_2(%arg0: i32) -> (i32, i32) {
    %c0_i32 = arith.constant 0 : i32
    %c0_i32_0 = arith.constant 0 : i32
    %c0_i32_1 = arith.constant 0 : i32
    return %c0_i32, %c0_i32_0 : i32, i32
  }
  func.func @transform_3(%arg0: i32) -> (i32, i32, i32) {
    %c0_i32 = arith.constant 0 : i32
    %c0_i32_0 = arith.constant 0 : i32
    %c0_i32_1 = arith.constant 0 : i32
    return %arg0, %c0_i32, %c0_i32_0 : i32, i32, i32
  }
}

</mosaic_0001>

<bundles_post_ra>
// kernel: relu_ins_conv2d.1
= control target key start
LH: loop header
LB: loop body
LE: loop exit
PB: predicated region body
PF: predicated region fallthrough
CT: control target
= control target key end

     0   :  { %s809_s12 = smov 0   ;;  %s856_s0 = inlined_call_operand.vmem [shape: bf16[2,4,512], index: 0, kind: input, shape index: {}]   ;;  %s857_s1 = inlined_call_operand.vmem [shape: bf16[8,36], index: 1, kind: input, shape index: {}]   ;;  %s858_s2 = inlined_call_operand.vmem [shape: f32[1,384], index: 2, kind: input, shape index: {}]   ;;  %s859_s3 = inlined_call_operand.vmem [shape: f32[2,8,384], index: 3, kind: output, shape index: {}]  }
   0x1 LB: > { %s693_s13 = sadd.s32 4294967295, %s775_s12   ;;  %p697_p0 = scmp.ge.s32.totalorder %s775_s12, 1  ;;  %s775_s12 = sphi %s809_s12, %s13_s12  }
   0x2   : > { %p137_p1 = scmp.lt.s32.totalorder %s775_s12, 3 }
   0x4   : > { %p138_p2 = pnand %p697_p0, %p137_p1 }
   0x5   : > { %p161_p3 = scmp.lt.s32.totalorder (!%p138_p2), %s693_s13, 1  ;;  %v199_v0 = vlaneseq (!%p138_p2)  ;;  %v777_v1 = vmov (!%p138_p2), 1983009808   ;;  %s778_s18 = smov (!%p138_p2), 126   ;;  %v781_v14 = vmov (!%p138_p2), 0.0   ;;  %v787_v15 = vmov (!%p138_p2), 0  }
   0x6   : > { %141 = sbr.rel (%p138_p2) target bundleno = 716 (0x2cc), region = 32  ;;  %v197_v2 = vunpack.c.l.s4 (!%p138_p2), %v777_v1  ;;  %s779_s19 = smov (!%p138_p2), 127   ;;  %722 = vmatprep.subr.bf16.mxu1 (!%p138_p2), %v781_v14  ;;  %539 = vmatprep.mubr.bf16.mxu0 (!%p138_p2), %v787_v15  ;;  %vm788_vm0 = vmmov (!%p138_p2), 0   ;;  %vm218_vm1 = vcmask (!%p138_p2), 1039360   ;;  %vm280_vm2 = vcmask (!%p138_p2), 900096  }
   0x7   : > { %v819_v3 = vshrl.u32 (!%p138_p2), %v199_v0, 7  ;;  %s780_s20 = smov (!%p138_p2), 110   ;;  %s782_s21 = smov (!%p138_p2), 109   ;;  %728 = vmatprep.mubr.msk.bf16.mxu1 (!%p138_p2), %vm788_vm0, %v781_v14  ;;  %vm216_vm3 = vcmask (!%p138_p2), 1043456   ;;  %vm249_vm4 = vcmask (!%p138_p2), 1031168   ;;  %vm311_vm5 = vcmask (!%p138_p2), 891904  }
   0x8   : > { %v198_v4 = vunpack.c.0.s8 (!%p138_p2), %v197_v2  ;;  %s783_s22 = smov (!%p138_p2), 108   ;;  %s784_s23 = smov (!%p138_p2), 92   ;;  %vm342_vm6 = vcmask (!%p138_p2), 883712   ;;  %vm373_vm7 = vcmask (!%p138_p2), 752640   ;;  %vm404_vm8 = vcmask (!%p138_p2), 744448  }
   0x9   : > { %s785_s24 = smov (!%p138_p2), 91   ;;  %s786_s25 = smov (!%p138_p2), 90   ;;  %vm435_vm9 = vcmask (!%p138_p2), 736256   ;;  %vm497_vm10 = vcmask (!%p138_p2), 1041408   ;;  %vm493_vm11 = vcmask (!%p138_p2), 293888  }
   0xa   : > { %v201_v5 = vsub.s32 (!%p138_p2), %v198_v4, %v819_v3 }
   0xd   : > { %s861_s13 = smov (!%p161_p3, %s693_s13), 1 }
   0xe   : > { %s717_s14 = sshll.u32 %s861_s13, 3  ;;  %s732_s30 = smul.u32 24, %s861_s13 }
   0xf   : > { %s165_s17 = scalar_lea.vmem %s856_s0, %s717_s14 }
  0x10   : > { %v225_v6 = vld [vmem:[%s165_s17] sm:$0xff]  ;;  %s170_s6 = scalar_lea.vmem %s859_s3, %s732_s30 }
  0x11   : > { %v172_v7 = vld [vmem:[%s165_s17] sm:$0x3f]  ;;  %v234_v8 = vrot.slane %v225_v6, %v201_v5  ;;  %v195_v9 = vcombine.low %v225_v6, %v225_v6  ;;  %v227_v11 = vcombine.high %v225_v6, %v225_v6 }
  0x12   : > { %v174_v10 = vcombine.high %v172_v7, %v172_v7  ;;  %701 = vst.sshfl [vmem:[#allocation2] sm:$0xf pattern:$0x76325410] %v172_v7 }
  0x13   : > { %242 = vrot.lane.b32.xlu1 %v234_v8, %s778_s18  ;;  %212 = vrot.lane.b32.xlu0 %v234_v8, %s779_s19  ;;  %v202_v12 = vrot.slane %v195_v9, %v201_v5  ;;  %v241_v13 = vrot.slane %v227_v11, %v201_v5 }
  0x14   : > { %702 = vst.sshfl [vmem:[#allocation2 + $0x8] sm:$0x3 pattern:$0x76325410] %v174_v10 }
  0x17   : > { %275 = vrot.lane.b32.xlu1 %v234_v8, %s780_s20  ;;  %210 = vrot.lane.b32.xlu0 %v202_v12, %s779_s19 }
  0x1b   : > { %244 = vrot.lane.b32.xlu1 %v241_v13, %s778_s18  ;;  %273 = vrot.lane.b32.xlu0 %v202_v12, %s780_s20 }
  0x1f   : > { %306 = vrot.lane.b32.xlu1 %v241_v13, %s782_s21  ;;  %304 = vrot.lane.b32.xlu0 %v234_v8, %s782_s21 }
  0x23   : > { %337 = vrot.lane.b32.xlu1 %v234_v8, %s783_s22  ;;  %335 = vrot.lane.b32.xlu0 %v202_v12, %s783_s22 }
  0x27   : > { %368 = vrot.lane.b32.xlu1 %v241_v13, %s784_s23  ;;  %366 = vrot.lane.b32.xlu0 %v234_v8, %s784_s23 }
  0x2b   : > { %399 = vrot.lane.b32.xlu1 %v234_v8, %s785_s24  ;;  %397 = vrot.lane.b32.xlu0 %v202_v12, %s785_s24 }
  0x2f   : > { %430 = vrot.lane.b32.xlu1 %v241_v13, %s786_s25  ;;  %428 = vrot.lane.b32.xlu0 %v234_v8, %s786_s25 }
  0x85   : > { %v243_v16 = vpop.permute.xlu1 %242  ;;  %v213_v17 = vpop.permute.xlu0 %212 }
  0x86   : > { %v215_v18 = vrot.slane %v213_v17, 4  ;;  %v246_v29 = vrot.slane %v243_v16, 4 }
  0x88   : > { %v220_v19 = vsel %vm218_vm1, %v213_v17, %v215_v18 }
  0x89   : > { %224 = vst [vmem:[#allocation2 + $0x8] sm:$0xc] %v220_v19  ;;  %v276_v20 = vpop.permute.xlu1 %275  ;;  %v211_v21 = vpop.permute.xlu0 %210 }
  0x8a   : > { %v278_v22 = vrot.slane %v276_v20, 4  ;;  %v214_v23 = vrot.slane %v211_v21, 4 }
  0x8c   : > { %v282_v24 = vsel %vm280_vm2, %v276_v20, %v278_v22  ;;  %v217_v25 = vsel %vm216_vm3, %v214_v23, %v215_v18  ;;  %v588_v23 = vld [vmem:[%s858_s2] sm:$0x7] }
  0x8d   : > { %286 = vst [vmem:[#allocation2 + $0x14] sm:$0xc] %v282_v24  ;;  %v219_v26 = vsel %vm218_vm1, %v211_v21, %v217_v25  ;;  %v245_v27 = vpop.permute.xlu1 %244  ;;  %v274_v28 = vpop.permute.xlu0 %273  ;;  %v442_v21 = vld [vmem:[%s857_s1] sm:$0xf]  ;;  %v600_v24 = vsub.s32 2, %v819_v3  ;;  %v596_v25 = vsub.s32 1, %v819_v3 }
  0x8e   : > { %223 = vst [vmem:[#allocation2] sm:$0xcc] %v219_v26  ;;  %v247_v30 = vrot.slane %v245_v27, 4  ;;  %v277_v31 = vrot.slane %v274_v28, 4 }
  0x90   : > { %v248_v32 = vsel %vm216_vm3, %v246_v29, %v247_v30  ;;  %v251_v33 = vsel %vm249_vm4, %v245_v27, %v247_v30  ;;  %v279_v34 = vsel %vm216_vm3, %v277_v31, %v278_v22  ;;  %v597_v29 = vrot.slane %v588_v23, %v596_v25 }
  0x91   : > { %v250_v35 = vsel %vm249_vm4, %v243_v16, %v248_v32  ;;  %255 = vst [vmem:[#allocation2 + $0x14] sm:$0x3] %v251_v33  ;;  %v281_v36 = vsel %vm280_vm2, %v274_v28, %v279_v34  ;;  %v307_v37 = vpop.permute.xlu1 %306  ;;  %v305_v38 = vpop.permute.xlu0 %304  ;;  %v601_v28 = vrot.slane %v588_v23, %v600_v24 }
  0x92   : > { %254 = vst [vmem:[#allocation2 + $0xc] sm:$0x33] %v250_v35  ;;  %285 = vst [vmem:[#allocation2 + $0xc] sm:$0xcc] %v281_v36  ;;  %v309_v39 = vrot.slane %v307_v37, 4  ;;  %v308_v40 = vrot.slane %v305_v38, 4 }
  0x94   : > { %v313_v41 = vsel %vm311_vm5, %v307_v37, %v309_v39  ;;  %v310_v42 = vsel %vm216_vm3, %v308_v40, %v309_v39 }
  0x95   : > { %317 = vst [vmem:[#allocation2 + $0x20] sm:$0x3] %v313_v41  ;;  %v312_v43 = vsel %vm311_vm5, %v305_v38, %v310_v42  ;;  %v338_v44 = vpop.permute.xlu1 %337  ;;  %v336_v45 = vpop.permute.xlu0 %335 }
  0x96   : > { %316 = vst [vmem:[#allocation2 + $0x18] sm:$0x33] %v312_v43  ;;  %v340_v46 = vrot.slane %v338_v44, 4  ;;  %v339_v47 = vrot.slane %v336_v45, 4 }
  0x98   : > { %v344_v48 = vsel %vm342_vm6, %v338_v44, %v340_v46  ;;  %v341_v49 = vsel %vm216_vm3, %v339_v47, %v340_v46  ;;  %v756_v50 = vld [vmem:[#allocation2 + $0x8] ss:$12 sps:$4 sm:$0xff]  }
  0x99   : > { %348 = vst [vmem:[#allocation2 + $0x20] sm:$0xc] %v344_v48  ;;  %v343_v51 = vsel %vm342_vm6, %v336_v45, %v341_v49  ;;  %v369_v52 = vpop.permute.xlu1 %368  ;;  %v367_v53 = vpop.permute.xlu0 %366  ;;  %v757_v54 = vld [vmem:[#allocation2 + $0x4] ss:$12 sps:$4 sm:$0xff]   ;;  %v759_v55 = vld [vmem:[#allocation2] ss:$12 sps:$4 sm:$0xff]   ;;  %723 = vmatpush3.bf16.msra.mxu1 %v756_v50 }
  0x9a   : > { %347 = vst [vmem:[#allocation2 + $0x18] sm:$0xcc] %v343_v51  ;;  %v371_v56 = vrot.slane %v369_v52, 4  ;;  %v370_v57 = vrot.slane %v367_v53, 4  ;;  %507 = vmatprep.subr.bf16.mxu0 %v757_v54  ;;  %724 = vmatprep.subr.bf16.mxu1 %v781_v14 }
  0x9b   : > { %508 = vmatpush1.bf16.msra.mxu0 %v759_v55 }
  0x9c   : > { %v375_v58 = vsel %vm373_vm7, %v369_v52, %v371_v56  ;;  %v372_v59 = vsel %vm216_vm3, %v370_v57, %v371_v56 }
  0x9d   : > { %379 = vst [vmem:[#allocation2 + $0x2c] sm:$0x3] %v375_v58  ;;  %v374_v60 = vsel %vm373_vm7, %v367_v53, %v372_v59  ;;  %v400_v61 = vpop.permute.xlu1 %399  ;;  %v398_v62 = vpop.permute.xlu0 %397 }
  0x9e   : > { %378 = vst [vmem:[#allocation2 + $0x24] sm:$0x33] %v374_v60  ;;  %v402_v63 = vrot.slane %v400_v61, 4  ;;  %v401_v0 = vrot.slane %v398_v62, 4 }
  0xa0   : > { %v406_v1 = vsel %vm404_vm8, %v400_v61, %v402_v63  ;;  %v403_v2 = vsel %vm216_vm3, %v401_v0, %v402_v63 }
  0xa1   : > { %410 = vst [vmem:[#allocation2 + $0x2c] sm:$0xc] %v406_v1  ;;  %v405_v4 = vsel %vm404_vm8, %v398_v62, %v403_v2  ;;  %v431_v5 = vpop.permute.xlu1 %430  ;;  %v429_v6 = vpop.permute.xlu0 %428 }
  0xa2   : > { %409 = vst [vmem:[#allocation2 + $0x24] sm:$0xcc] %v405_v4  ;;  %v433_v7 = vrot.slane %v431_v5, 4  ;;  %v432_v8 = vrot.slane %v429_v6, 4 }
  0xa4   : > { %v437_v9 = vsel %vm435_vm9, %v431_v5, %v433_v7  ;;  %v434_v10 = vsel %vm216_vm3, %v432_v8, %v433_v7 }
  0xa5   : > { %441 = vst [vmem:[#allocation2 + $0x38] sm:$0x3] %v437_v9  ;;  %v436_v11 = vsel %vm435_vm9, %v429_v6, %v434_v10 }
  0xa6   : > { %440 = vst [vmem:[#allocation2 + $0x30] sm:$0x33] %v436_v11 }
  0xa8   : > { %v760_v12 = vld [vmem:[#allocation2 + $0x20] ss:$12 sps:$4 sm:$0xff]  }
  0xa9   : > { %v761_v13 = vld [vmem:[#allocation2 + $0x1c] ss:$12 sps:$4 sm:$0xff]   ;;  %v763_v15 = vld [vmem:[#allocation2 + $0x18] ss:$12 sps:$4 sm:$0xff]   ;;  %725 = vmatpush3.bf16.msra.mxu1 %v760_v12 }
  0xaa   : > { %509 = vmatprep.subr.bf16.mxu0 %v761_v13  ;;  %726 = vmatprep.subr.bf16.mxu1 %v781_v14  ;;  %v592_v14 = vsub.s32 0, %v819_v3 }
  0xab   : > { %510 = vmatpush1.bf16.msra.mxu0 %v763_v15 }
  0xac   : > { %v765_v16 = vld [vmem:[#allocation2 + $0x38] ss:$0 sps:$4 sm:$0x33]   ;;  %v593_v26 = vrot.slane %v588_v23, %v592_v14 }
  0xad   : > { %v451_v17 = vld [vmem:[#allocation2 + $0x30] sm:$0x33]  ;;  %v505_v19 = vsel %vm497_vm10, %v765_v16, 0 }
  0xae   : > { %v710_v18 = vcombine.high %v451_v17, %v451_v17  ;;  %v709_v20 = vcombine.low %v451_v17, %v451_v17  ;;  %727 = vmatpush3.bf16.msra.mxu1 %v505_v19 }
  0xb0   : > { %712 = vmatprep.subr.msk.bf16.mxu0 %vm497_vm10, %v710_v18  ;;  %v499_v22 = vsel %vm497_vm10, %v709_v20, 0 }
  0xb1   : > { %512 = vmatpush1.bf16.msra.mxu0 %v499_v22  ;;  %729 = vmatmul.mubr.msk.bf16.vlgmr.msra.gmra.mrb[0].mxu1 %vm493_vm11, %v442_v21 }
  0xb4   : > { %713 = vmatmul.mubr.msk.bf16.vlgmr.msra.gmra.mrb[0].mxu0 %vm493_vm11, %v442_v21 }
 0x184   : > { %v582_v27 = vpop.f32.mrb[0].mxu1 }
 0x185   : > { %v730_v30 = vpop.f32.mrb[1].mxu1  ;;  %v607_v36 = vmul.f32 %v601_v28, %v582_v27 }
 0x186   : > { %v585_v32 = vpop.f32.mrb[2].mxu1 }
 0x187   : > { %v541_v31 = vpop.f32.mrb[0].mxu0  ;;  %v731_v35 = vpop.f32.mrb[3].mxu1 }
 0x188   : > { %v605_v33 = vmul.f32 %v593_v26, %v541_v31  ;;  %v543_v34 = vpop.f32.mrb[1].mxu0 }
 0x189   : > { %v606_v37 = vmul.f32 %v597_v29, %v543_v34  ;;  %v545_v38 = vpop.f32.mrb[2].mxu0 }
 0x18a   : > { %v546_v39 = vpop.f32.mrb[3].mxu0 }
 0x18b   : > { %v608_v40 = vadd.f32 %v606_v37, %v605_v33 }
 0x18d   : > { %v609_v41 = vadd.f32 %v608_v40, %v607_v36 }
 0x18f   : > { %610 = vadd.xlane.f32.xlu0 %v609_v41 }
 0x21c   : > { %v611_v42 = vpop.xlane.xlu0 %610 }
 0x21d   : > { %v612_v43 = vmul.f32 0.00390625, %v611_v42 }
 0x21f   : > { %v613_v3 = vsub.f32 %v541_v31, %v612_v43  ;;  %v614_v44 = vsub.f32 %v543_v34, %v612_v43  ;;  %v615_v45 = vsub.f32 %v582_v27, %v612_v43 }
 0x221   : > { %v616_v46 = vmul.f32 %v613_v3, %v593_v26  ;;  %v617_v47 = vmul.f32 %v614_v44, %v597_v29  ;;  %v618_v48 = vmul.f32 %v615_v45, %v601_v28 }
 0x223   : > { %v619_v49 = vmul.f32 %v616_v46, %v616_v46  ;;  %v620_v50 = vmul.f32 %v617_v47, %v617_v47  ;;  %v621_v51 = vmul.f32 %v618_v48, %v618_v48 }
 0x225   : > { %v622_v52 = vadd.f32 %v620_v50, %v619_v49 }
 0x227   : > { %v623_v53 = vadd.f32 %v622_v52, %v621_v51 }
 0x229   : > { %624 = vadd.xlane.f32.xlu1 %v623_v53 }
 0x2b6   : > { %v625_v54 = vpop.xlane.xlu1 %624 }
 0x2b7   : > { %v626_v55 = vmul.f32 0.00390625, %v625_v54 }
 0x2b9   : > { %v627_v56 = vadd.f32 1e-05, %v626_v55 }
 0x2bb   : > { %767 = vrsqrt.f32 %v627_v56 }
 0x2c5   : > { %v768_v57 = vpop.eup %767 }
 0x2c6   : > { %v629_v58 = vmul.f32 %v768_v57, %v613_v3  ;;  %v630_v59 = vmul.f32 %v768_v57, %v614_v44  ;;  %v631_v60 = vmul.f32 %v768_v57, %v615_v45 }
 0x2c8   : > { %v632_v61 = vmax.f32 %v629_v58, 0.0  ;;  %v633_v62 = vmax.f32 %v630_v59, 0.0  ;;  %v634_v63 = vmax.f32 %v631_v60, 0.0 }
 0x2ca   : > { %635 = vst [vmem:[%s170_s6] sm:$0xff] %v632_v61  ;;  %636 = vst [vmem:[%s170_s6 + $0x8] sm:$0xff] %v633_v62 }
 0x2cb   : > { %637 = vst [vmem:[%s170_s6 + $0x10] sm:$0xff] %v634_v63 }
 0x2cc PF: > { %s13_s12 = sadd.s32 1, %s775_s12  }
 0x2cd   : > { %p10_p4 = scmp.ge.s32.totalorder %s13_s12, 4  }
 0x2cf   :  { %12 = sbr.rel (!%p10_p4) target bundleno = 1 (0x1), region = 62 }

</bundles_post_ra>
